<compile_context>
chip_gen: v5e
topology: v5e:2x2
jax: 0.10.0
libtpu: 0.0.40
codegen_flags: <defaults>
</compile_context>

<pallas_src>
import math

import jax
import jax.numpy as jnp
from jax import lax
from jax.experimental import pallas as pl
from jax.experimental.pallas import tpu as pltpu

_LANES = 128
_SUBLANES = 8


def _num_tensorcores():
    """Best-effort TensorCores-per-chip (2 on megacore chips such as v7x)."""
    try:
        info = pltpu.get_tpu_info()
    except Exception:
        return 1
    for name in ("num_tensorcores", "tensorcores_per_chip", "cores_per_chip",
                 "num_cores_per_chip", "tensorcore_count"):
        val = getattr(info, name, None)
        try:
            val = int(val)
        except (TypeError, ValueError):
            continue
        if 1 <= val <= 8:
            return val
    return 1


def _bce_weighted_kernel(nvalid_ref, x_ref, t_ref, cw_ref, delta_ref,
                         out_ref, a_acc, b_acc):
    p = pl.program_id(0)
    i = pl.program_id(1)
    n_inner = pl.num_programs(1)
    tm = x_ref.shape[0]            # rows per block
    P = a_acc.shape[0]             # lcm(C, 8): class-residue period over rows

    # Zero the per-partition residue accumulators at the start of the
    # inner (reduction) axis.
    @pl.when(i == 0)
    def _():
        a_acc[...] = jnp.zeros_like(a_acc)
        b_acc[...] = jnp.zeros_like(b_acc)

    x = x_ref[...].astype(jnp.float32)           # (tm, 128)
    t = t_ref[...].astype(jnp.float32)           # (tm, 128)

    # Stable softplus(-x).
    sp = jnp.log1p(jnp.exp(-jnp.abs(x))) + jnp.maximum(-x, 0.0)
    a = (1.0 - t) * x + sp                       # term multiplied by cw
    b = t * sp                                   # term multiplied by cw*(pw-1)

    # Only blocks that reach past the valid element count pay the mask.
    blk = p * n_inner + i
    base = blk * (tm * _LANES)
    nvalid = nvalid_ref[0]
    needs_mask = base + tm * _LANES > nvalid

    @pl.when(jnp.logical_not(needs_mask))
    def _():
        a_acc[...] += a.reshape(-1, P, _LANES).sum(axis=0)
        b_acc[...] += b.reshape(-1, P, _LANES).sum(axis=0)

    @pl.when(needs_mask)
    def _():
        rows = lax.broadcasted_iota(jnp.int32, (tm, _LANES), 0)
        lanes = lax.broadcasted_iota(jnp.int32, (tm, _LANES), 1)
        valid = base + rows * _LANES + lanes < nvalid
        # Mask AFTER computing a/b so garbage in the ragged tail (possibly
        # inf/NaN) cannot propagate into the accumulators.
        a_acc[...] += jnp.where(valid, a, 0.0).reshape(-1, P, _LANES).sum(axis=0)
        b_acc[...] += jnp.where(valid, b, 0.0).reshape(-1, P, _LANES).sum(axis=0)

    # Apply the per-class weights once per partition and fold down to the
    # (8, 128) vreg-shaped partial-sum output block.
    @pl.when(i == n_inner - 1)
    def _():
        w = cw_ref[...] * a_acc[...] + delta_ref[...] * b_acc[...]   # (P, 128)
        out_ref[...] = w.reshape(-1, _SUBLANES, _LANES).sum(axis=0)[None]


def bce_logits_loss_weighted(inp, target, class_weights, pos_weight,
                             *, block_rows=8192, num_parallel=None):
    """inp, target: (N, L, C); class_weights, pos_weight: (C,). Returns scalar."""
    N, L, C = inp.shape
    M = N * L
    flat_len = M * C

    P = (C * _SUBLANES) // math.gcd(C, _SUBLANES)          # lcm(C, 8)

    # Lane-dense flat view: (R_pad, 128) rows of 128 lanes.
    R = -(-flat_len // _LANES)
    R_pad = max(R, P)              # tiny inputs: a single exact (P,128) block
    pad = R_pad * _LANES - flat_len
    x = inp.reshape(-1)
    t = target.reshape(-1)
    if pad:
        # Only hit when flat_len % 128 != 0 (or the input is tiny).  The pad
        # value is irrelevant: padded positions are masked inside the kernel.
        # TODO(synk): this residual pad still costs one XLA copy of x/t; a
        # manual 1-D DMA kernel could avoid it entirely.
        x = jnp.concatenate([x, jnp.zeros((pad,), dtype=x.dtype)])
        t = jnp.concatenate([t, jnp.zeros((pad,), dtype=t.dtype)])
    x = x.reshape(R_pad, _LANES)
    t = t.reshape(R_pad, _LANES)

    # Row-tile: multiple of P (every block starts on a class boundary) and no
    # larger than the array, so only the final block can be ragged.
    tm = max(P, (min(block_rows, R_pad) // P) * P)
    n_blocks = -(-R_pad // tm)

    if num_parallel is None:
        num_parallel = _num_tensorcores()
    num_parallel = max(1, min(num_parallel, n_blocks))
    n_inner = -(-n_blocks // num_parallel)

    # Small (P,128) per-class weight patterns, resident in VMEM.
    cw = class_weights.astype(jnp.float32)
    delta = cw * (pos_weight.astype(jnp.float32) - 1.0)
    cls = (jnp.arange(P * _LANES, dtype=jnp.int32) % C).reshape(P, _LANES)
    cw_pat = cw[cls]
    delta_pat = delta[cls]

    nvalid = jnp.array([flat_len], dtype=jnp.int32)

    def data_map(pi, ii, nv_ref):
        # Clamp so over-covering grid points (when n_blocks is not a multiple
        # of num_parallel) re-read the last block instead of running off the
        # end; their contribution is fully masked in the kernel.
        return (jnp.minimum(pi * n_inner + ii, n_blocks - 1), 0)

    data_spec = pl.BlockSpec((tm, _LANES), data_map)
    pat_spec = pl.BlockSpec((P, _LANES), lambda pi, ii, nv: (0, 0))

    lead_sem = pltpu.CORE_PARALLEL if num_parallel > 1 else pltpu.ARBITRARY

    partials = pl.pallas_call(
        _bce_weighted_kernel,
        out_shape=jax.ShapeDtypeStruct((num_parallel, _SUBLANES, _LANES),
                                       jnp.float32),
        grid_spec=pltpu.PrefetchScalarGridSpec(
            num_scalar_prefetch=1,
            grid=(num_parallel, n_inner),
            in_specs=[data_spec, data_spec, pat_spec, pat_spec],
            out_specs=pl.BlockSpec((1, _SUBLANES, _LANES),
                                   lambda pi, ii, nv: (pi, 0, 0)),
            scratch_shapes=[pltpu.VMEM((P, _LANES), jnp.float32),
                            pltpu.VMEM((P, _LANES), jnp.float32)]),
        compiler_params=pltpu.CompilerParams(
            dimension_semantics=(lead_sem, pltpu.ARBITRARY),
            vmem_limit_bytes=32 * 1024 * 1024),
    )(nvalid, x, t, cw_pat, delta_pat)

    # Tiny final cross-lane reduction + mean normalization in the wrapper.
    return (jnp.sum(partials) * (1.0 / float(M))).astype(inp.dtype)


def _reference(inp, target, class_weights, pos_weight):
    x = inp.astype(jnp.float32)
    t = target.astype(jnp.float32)
    pw = pos_weight.astype(jnp.float32)[None, None, :]
    cw = class_weights.astype(jnp.float32)
    log_weight = 1.0 + (pw - 1.0) * t
    elem = (1.0 - t) * x + log_weight * (jnp.log1p(jnp.exp(-jnp.abs(x)))
                                         + jnp.maximum(-x, 0.0))
    per_class_mean = jnp.mean(elem, axis=(0, 1))
    return jnp.sum(cw * per_class_mean).astype(inp.dtype)


if __name__ == "__main__":
    key = jax.random.PRNGKey(0)
    k1, k2, k3, k4, k5, k6 = jax.random.split(key, 6)

    class_weights = jnp.array([1.0, 2.0, 0.5], dtype=jnp.float32)
    pos_weight = jnp.array([1.5, 0.75, 2.0], dtype=jnp.float32)
    C = 3

    # Small test: single block, in-kernel tail masking (flat_len = 384).
    N, L = 2, 64
    inp = jax.random.normal(k1, (N, L, C), dtype=jnp.float32)
    target = (jax.random.uniform(k2, (N, L, C)) > 0.5).astype(jnp.float32)
    loss = jax.block_until_ready(
        bce_logits_loss_weighted(inp, target, class_weights, pos_weight))
    ref = _reference(inp, target, class_weights, pos_weight)
    assert jnp.allclose(loss, ref, rtol=1e-4, atol=1e-6), (loss, ref)

    # Medium test: multi-step grid with a ragged (masked) final block and no
    # host-side padding at all (48000 = 375 * 128).
    N2, L2 = 4, 4000
    inp2 = jax.random.normal(k3, (N2, L2, C), dtype=jnp.float32)
    target2 = (jax.random.uniform(k4, (N2, L2, C)) > 0.5).astype(jnp.float32)
    loss2 = jax.block_until_ready(
        bce_logits_loss_weighted(inp2, target2, class_weights, pos_weight,
                                 block_rows=96))
    ref2 = _reference(inp2, target2, class_weights, pos_weight)
    assert jnp.allclose(loss2, ref2, rtol=1e-4, atol=1e-6), (loss2, ref2)

    # bf16 inputs + flat length not a multiple of 128 (exercises the <128
    # element tail pad and the masked ragged block).
    N3, L3 = 5, 999
    inp3 = jax.random.normal(k5, (N3, L3, C), dtype=jnp.float32).astype(jnp.bfloat16)
    target3 = (jax.random.uniform(k6, (N3, L3, C)) > 0.5).astype(jnp.bfloat16)
    loss3 = jax.block_until_ready(
        bce_logits_loss_weighted(inp3, target3, class_weights, pos_weight))
    ref3 = _reference(inp3, target3, class_weights, pos_weight)
    assert jnp.allclose(loss3.astype(jnp.float32), ref3.astype(jnp.float32),
                        rtol=2e-2, atol=1e-3), (loss3, ref3)

    print("KERNEL_OK")
</pallas_src>

<mosaic_0001>
module attributes {stable_mosaic.version = 11 : i64} {
  func.func @_bce_weighted_kernel(%arg0: i32, %arg1: i32, %arg2: memref<1xi32, #tpu.memory_space<smem>>, %arg3: memref<24x128xf32, #tpu.memory_space<vmem>>, %arg4: memref<24x128xf32, #tpu.memory_space<vmem>>, %arg5: memref<24x128xf32, #tpu.memory_space<vmem>>, %arg6: memref<24x128xf32, #tpu.memory_space<vmem>>, %arg7: memref<1x8x128xf32, #tpu.memory_space<vmem>>, %arg8: memref<24x128xf32, #tpu.memory_space<vmem>>, %arg9: memref<24x128xf32, #tpu.memory_space<vmem>>) attributes {dimension_semantics = [#tpu.dimension_semantics<arbitrary>, #tpu.dimension_semantics<arbitrary>], iteration_bounds = array<i64: 1, 1>, scalar_prefetch = 1 : i64, scratch_operands = 2 : i64, tpu.core_type = #tpu.core_type<tc>, window_params = [{transform_indices = @transform_0, window_bounds = array<i64: 24, 128>}, {transform_indices = @transform_1, window_bounds = array<i64: 24, 128>}, {pipeline_mode = #tpu.pipeline_mode<synchronous>, transform_indices = @transform_2, window_bounds = array<i64: 24, 128>}, {pipeline_mode = #tpu.pipeline_mode<synchronous>, transform_indices = @transform_3, window_bounds = array<i64: 24, 128>}, {transform_indices = @transform_4, window_bounds = array<i64: 1, 8, 128>}]} {
    %c0_i32 = arith.constant 0 : i32
    %0 = arith.cmpi eq, %arg1, %c0_i32 : i32
    %1 = arith.extui %0 : i1 to i32
    %c0_i32_0 = arith.constant 0 : i32
    %2 = arith.cmpi ne, %1, %c0_i32_0 : i32
    scf.if %2 {
      %cst_13 = arith.constant 0.000000e+00 : f32
      %34 = vector.broadcast %cst_13 : f32 to vector<24x128xf32>
      %c0_14 = arith.constant 0 : index
      %c0_15 = arith.constant 0 : index
      %35 = vector.load %arg8[%c0_14, %c0_15] : memref<24x128xf32, #tpu.memory_space<vmem>>, vector<24x128xf32>
      tpu.vector_store %arg8[%c0_14, %c0_15], %34 {strides = array<i32>} : memref<24x128xf32, #tpu.memory_space<vmem>>, vector<24x128xf32>,
      %cst_16 = arith.constant 0.000000e+00 : f32
      %36 = vector.broadcast %cst_16 : f32 to vector<24x128xf32>
      %c0_17 = arith.constant 0 : index
      %c0_18 = arith.constant 0 : index
      %37 = vector.load %arg9[%c0_17, %c0_18] : memref<24x128xf32, #tpu.memory_space<vmem>>, vector<24x128xf32>
      tpu.vector_store %arg9[%c0_17, %c0_18], %36 {strides = array<i32>} : memref<24x128xf32, #tpu.memory_space<vmem>>, vector<24x128xf32>,
    } else {
    }
    %c0 = arith.constant 0 : index
    %c0_1 = arith.constant 0 : index
    %3 = vector.load %arg3[%c0, %c0_1] : memref<24x128xf32, #tpu.memory_space<vmem>>, vector<24x128xf32>
    %c0_2 = arith.constant 0 : index
    %c0_3 = arith.constant 0 : index
    %4 = vector.load %arg4[%c0_2, %c0_3] : memref<24x128xf32, #tpu.memory_space<vmem>>, vector<24x128xf32>
    %5 = math.absf %3 : vector<24x128xf32>
    %cst = arith.constant 0.000000e+00 : f32
    %6 = vector.broadcast %cst : f32 to vector<24x128xf32>
    %7 = arith.subf %6, %5 : vector<24x128xf32>
    %8 = math.exp %7 : vector<24x128xf32>
    %9 = math.log1p %8 : vector<24x128xf32>
    %cst_4 = arith.constant 0.000000e+00 : f32
    %10 = vector.broadcast %cst_4 : f32 to vector<24x128xf32>
    %11 = arith.subf %10, %3 : vector<24x128xf32>
    %cst_5 = arith.constant 0.000000e+00 : f32
    %12 = vector.broadcast %cst_5 : f32 to vector<24x128xf32>
    %13 = arith.maximumf %11, %12 : vector<24x128xf32>
    %14 = arith.addf %9, %13 : vector<24x128xf32>
    %cst_6 = arith.constant 1.000000e+00 : f32
    %15 = vector.broadcast %cst_6 : f32 to vector<24x128xf32>
    %16 = arith.subf %15, %4 : vector<24x128xf32>
    %17 = arith.mulf %16, %3 : vector<24x128xf32>
    %18 = arith.addf %17, %14 : vector<24x128xf32>
    %19 = arith.mulf %4, %14 : vector<24x128xf32>
    %c1_i32 = arith.constant 1 : i32
    %20 = arith.muli %arg0, %c1_i32 : i32
    %21 = arith.addi %20, %arg1 : i32
    %c3072_i32 = arith.constant 3072 : i32
    %22 = arith.muli %21, %c3072_i32 : i32
    %c0_7 = arith.constant 0 : index
    %23 = memref.load %arg2[%c0_7] : memref<1xi32, #tpu.memory_space<smem>>
    %c3072_i32_8 = arith.constant 3072 : i32
    %24 = arith.addi %22, %c3072_i32_8 : i32
    %25 = arith.cmpi sgt, %24, %23 : i32
    %true = arith.constant true
    %26 = arith.xori %25, %true : i1
    %27 = arith.extui %26 : i1 to i32
    %c0_i32_9 = arith.constant 0 : i32
    %28 = arith.cmpi ne, %27, %c0_i32_9 : i32
    scf.if %28 {
      %c0_13 = arith.constant 0 : index
      %c0_14 = arith.constant 0 : index
      %34 = vector.load %arg8[%c0_13, %c0_14] : memref<24x128xf32, #tpu.memory_space<vmem>>, vector<24x128xf32>
      %35 = vector.shape_cast %18 : vector<24x128xf32> to vector<1x24x128xf32>
      %cst_15 = arith.constant dense<0.000000e+00> : vector<24x128xf32>
      %36 = vector.multi_reduction <add>, %35, %cst_15 [0] : vector<1x24x128xf32> to vector<24x128xf32>
      %37 = arith.addf %34, %36 : vector<24x128xf32>
      %c0_16 = arith.constant 0 : index
      %c0_17 = arith.constant 0 : index
      %38 = vector.load %arg8[%c0_16, %c0_17] : memref<24x128xf32, #tpu.memory_space<vmem>>, vector<24x128xf32>
      tpu.vector_store %arg8[%c0_16, %c0_17], %37 {strides = array<i32>} : memref<24x128xf32, #tpu.memory_space<vmem>>, vector<24x128xf32>,
      %c0_18 = arith.constant 0 : index
      %c0_19 = arith.constant 0 : index
      %39 = vector.load %arg9[%c0_18, %c0_19] : memref<24x128xf32, #tpu.memory_space<vmem>>, vector<24x128xf32>
      %40 = vector.shape_cast %19 : vector<24x128xf32> to vector<1x24x128xf32>
      %cst_20 = arith.constant dense<0.000000e+00> : vector<24x128xf32>
      %41 = vector.multi_reduction <add>, %40, %cst_20 [0] : vector<1x24x128xf32> to vector<24x128xf32>
      %42 = arith.addf %39, %41 : vector<24x128xf32>
      %c0_21 = arith.constant 0 : index
      %c0_22 = arith.constant 0 : index
      %43 = vector.load %arg9[%c0_21, %c0_22] : memref<24x128xf32, #tpu.memory_space<vmem>>, vector<24x128xf32>
      tpu.vector_store %arg9[%c0_21, %c0_22], %42 {strides = array<i32>} : memref<24x128xf32, #tpu.memory_space<vmem>>, vector<24x128xf32>,
    } else {
    }
    %29 = arith.extui %25 : i1 to i32
    %c0_i32_10 = arith.constant 0 : i32
    %30 = arith.cmpi ne, %29, %c0_i32_10 : i32
    scf.if %30 {
      %34 = tpu.iota {dimensions = array<i32: 0>} : vector<24x128xi32>
      %35 = tpu.iota {dimensions = array<i32: 1>} : vector<24x128xi32>
      %c128_i32 = arith.constant 128 : i32
      %36 = vector.broadcast %c128_i32 : i32 to vector<24x128xi32>
      %37 = arith.muli %34, %36 : vector<24x128xi32>
      %38 = vector.broadcast %22 : i32 to vector<24x128xi32>
      %39 = arith.addi %38, %37 : vector<24x128xi32>
      %40 = arith.addi %39, %35 : vector<24x128xi32>
      %41 = vector.broadcast %23 : i32 to vector<24x128xi32>
      %42 = arith.cmpi slt, %40, %41 : vector<24x128xi32>
      %c0_13 = arith.constant 0 : index
      %c0_14 = arith.constant 0 : index
      %43 = vector.load %arg8[%c0_13, %c0_14] : memref<24x128xf32, #tpu.memory_space<vmem>>, vector<24x128xf32>
      %cst_15 = arith.constant 0.000000e+00 : f32
      %44 = vector.broadcast %cst_15 : f32 to vector<24x128xf32>
      %45 = arith.select %42, %18, %44 : vector<24x128xi1>, vector<24x128xf32>
      %46 = vector.shape_cast %45 : vector<24x128xf32> to vector<1x24x128xf32>
      %cst_16 = arith.constant dense<0.000000e+00> : vector<24x128xf32>
      %47 = vector.multi_reduction <add>, %46, %cst_16 [0] : vector<1x24x128xf32> to vector<24x128xf32>
      %48 = arith.addf %43, %47 : vector<24x128xf32>
      %c0_17 = arith.constant 0 : index
      %c0_18 = arith.constant 0 : index
      %49 = vector.load %arg8[%c0_17, %c0_18] : memref<24x128xf32, #tpu.memory_space<vmem>>, vector<24x128xf32>
      tpu.vector_store %arg8[%c0_17, %c0_18], %48 {strides = array<i32>} : memref<24x128xf32, #tpu.memory_space<vmem>>, vector<24x128xf32>,
      %c0_19 = arith.constant 0 : index
      %c0_20 = arith.constant 0 : index
      %50 = vector.load %arg9[%c0_19, %c0_20] : memref<24x128xf32, #tpu.memory_space<vmem>>, vector<24x128xf32>
      %cst_21 = arith.constant 0.000000e+00 : f32
      %51 = vector.broadcast %cst_21 : f32 to vector<24x128xf32>
      %52 = arith.select %42, %19, %51 : vector<24x128xi1>, vector<24x128xf32>
      %53 = vector.shape_cast %52 : vector<24x128xf32> to vector<1x24x128xf32>
      %cst_22 = arith.constant dense<0.000000e+00> : vector<24x128xf32>
      %54 = vector.multi_reduction <add>, %53, %cst_22 [0] : vector<1x24x128xf32> to vector<24x128xf32>
      %55 = arith.addf %50, %54 : vector<24x128xf32>
      %c0_23 = arith.constant 0 : index
      %c0_24 = arith.constant 0 : index
      %56 = vector.load %arg9[%c0_23, %c0_24] : memref<24x128xf32, #tpu.memory_space<vmem>>, vector<24x128xf32>
      tpu.vector_store %arg9[%c0_23, %c0_24], %55 {strides = array<i32>} : memref<24x128xf32, #tpu.memory_space<vmem>>, vector<24x128xf32>,
    } else {
    }
    %c0_i32_11 = arith.constant 0 : i32
    %31 = arith.cmpi eq, %arg1, %c0_i32_11 : i32
    %32 = arith.extui %31 : i1 to i32
    %c0_i32_12 = arith.constant 0 : i32
    %33 = arith.cmpi ne, %32, %c0_i32_12 : i32
    scf.if %33 {
      %c0_13 = arith.constant 0 : index
      %c0_14 = arith.constant 0 : index
      %34 = vector.load %arg5[%c0_13, %c0_14] : memref<24x128xf32, #tpu.memory_space<vmem>>, vector<24x128xf32>
      %c0_15 = arith.constant 0 : index
      %c0_16 = arith.constant 0 : index
      %35 = vector.load %arg8[%c0_15, %c0_16] : memref<24x128xf32, #tpu.memory_space<vmem>>, vector<24x128xf32>
      %36 = arith.mulf %34, %35 : vector<24x128xf32>
      %c0_17 = arith.constant 0 : index
      %c0_18 = arith.constant 0 : index
      %37 = vector.load %arg6[%c0_17, %c0_18] : memref<24x128xf32, #tpu.memory_space<vmem>>, vector<24x128xf32>
      %c0_19 = arith.constant 0 : index
      %c0_20 = arith.constant 0 : index
      %38 = vector.load %arg9[%c0_19, %c0_20] : memref<24x128xf32, #tpu.memory_space<vmem>>, vector<24x128xf32>
      %39 = arith.mulf %37, %38 : vector<24x128xf32>
      %40 = arith.addf %36, %39 : vector<24x128xf32>
      %41 = vector.shape_cast %40 : vector<24x128xf32> to vector<3x8x128xf32>
      %cst_21 = arith.constant dense<0.000000e+00> : vector<8x128xf32>
      %42 = vector.multi_reduction <add>, %41, %cst_21 [0] : vector<3x8x128xf32> to vector<8x128xf32>
      %43 = vector.shape_cast %42 : vector<8x128xf32> to vector<1x8x128xf32>
      %c0_22 = arith.constant 0 : index
      %c0_23 = arith.constant 0 : index
      %c0_24 = arith.constant 0 : index
      %44 = vector.load %arg7[%c0_22, %c0_23, %c0_24] : memref<1x8x128xf32, #tpu.memory_space<vmem>>, vector<1x8x128xf32>
      tpu.vector_store %arg7[%c0_22, %c0_23, %c0_24], %43 {strides = array<i32>} : memref<1x8x128xf32, #tpu.memory_space<vmem>>, vector<1x8x128xf32>,
    } else {
    }
    return
  }
  func.func @transform_0(%arg0: i32, %arg1: i32, %arg2: memref<1xi32, #tpu.memory_space<smem>>) -> (i32, i32) {
    %c1_i32 = arith.constant 1 : i32
    %0 = arith.muli %arg0, %c1_i32 : i32
    %1 = arith.addi %0, %arg1 : i32
    %c0_i32 = arith.constant 0 : i32
    %2 = arith.minsi %1, %c0_i32 : i32
    %c0_i32_0 = arith.constant 0 : i32
    %c0_i32_1 = arith.constant 0 : i32
    return %2, %c0_i32_0 : i32, i32
  }
  func.func @transform_1(%arg0: i32, %arg1: i32, %arg2: memref<1xi32, #tpu.memory_space<smem>>) -> (i32, i32) {
    %c1_i32 = arith.constant 1 : i32
    %0 = arith.muli %arg0, %c1_i32 : i32
    %1 = arith.addi %0, %arg1 : i32
    %c0_i32 = arith.constant 0 : i32
    %2 = arith.minsi %1, %c0_i32 : i32
    %c0_i32_0 = arith.constant 0 : i32
    %c0_i32_1 = arith.constant 0 : i32
    return %2, %c0_i32_0 : i32, i32
  }
  func.func @transform_2(%arg0: i32, %arg1: i32, %arg2: memref<1xi32, #tpu.memory_space<smem>>) -> (i32, i32) {
    %c0_i32 = arith.constant 0 : i32
    %c0_i32_0 = arith.constant 0 : i32
    %c0_i32_1 = arith.constant 0 : i32
    return %c0_i32, %c0_i32_0 : i32, i32
  }
  func.func @transform_3(%arg0: i32, %arg1: i32, %arg2: memref<1xi32, #tpu.memory_space<smem>>) -> (i32, i32) {
    %c0_i32 = arith.constant 0 : i32
    %c0_i32_0 = arith.constant 0 : i32
    %c0_i32_1 = arith.constant 0 : i32
    return %c0_i32, %c0_i32_0 : i32, i32
  }
  func.func @transform_4(%arg0: i32, %arg1: i32, %arg2: memref<1xi32, #tpu.memory_space<smem>>) -> (i32, i32, i32) {
    %c0_i32 = arith.constant 0 : i32
    %c0_i32_0 = arith.constant 0 : i32
    %c0_i32_1 = arith.constant 0 : i32
    return %arg0, %c0_i32, %c0_i32_0 : i32, i32, i32
  }
}

</mosaic_0001>

<bundles_post_ra>
// kernel: tpu_custom_call.1
= control target key start
LH: loop header
LB: loop body
LE: loop exit
PB: predicated region body
PF: predicated region fallthrough
CT: control target
= control target key end

     0   :  { %11 = vsyncpa [#allocation7], 0  ;;  %s540_s0 = inlined_call_operand.<no memory space> [shape: s32[1], index: 0, kind: input, shape index: {}]   ;;  %s541_s1 = inlined_call_operand.hbm [shape: f32[24,128], index: 1, kind: input, shape index: {}]   ;;  %s542_s2 = inlined_call_operand.hbm [shape: f32[24,128], index: 2, kind: input, shape index: {}]   ;;  %s543_s3 = inlined_call_operand.hbm [shape: f32[24,128], index: 3, kind: input, shape index: {}]   ;;  %s544_s4 = inlined_call_operand.hbm [shape: f32[24,128], index: 4, kind: input, shape index: {}]   ;;  %s545_s5 = inlined_call_operand.hbm [shape: f32[1,8,128], index: 5, kind: output, shape index: {}]  }
   0x1   :  { %12 = vsyncpa [#allocation10], 0 }
   0x2   :  { %13 = vsyncpa [#allocation13], 0 }
   0x3   :  { %14 = vsyncpa [#allocation8], 0  ;;  %s44_s20 = sshll.u32 %s542_s2, 4  ;;  %s467_s21 = smov [#allocation9]   ;;  %s45_s20 = int_to_ptr.hbm [resolvable:$true] %s44_s20 }
   0x4   :  { %s46_s22 = sshll.u32 %s467_s21, 4  ;;  %s25_s25 = sshll.u32 %s541_s1, 4  ;;  %s47_s22 = int_to_ptr.vmem [resolvable:$true] %s46_s22  ;;  %s26_s25 = int_to_ptr.hbm [resolvable:$true] %s25_s25 }
   0x5   :  { %s468_s26 = smov 128   ;;  %s469_s27 = smov 8  }
   0x6   :  { %52 = dma.hbm_to_vmem [thread:$0]  %s45_s20, 384, %s47_s22, [#allocation10], %s468_s26, %s468_s26, %s469_s27  }
   0x7   :  { %s470_s28 = smov [#allocation6]   ;;  %s57_s7 = sshll.u32 %s543_s3, 4  ;;  %s58_s7 = int_to_ptr.hbm [resolvable:$true] %s57_s7 }
   0x8   :  { %s27_s29 = sshll.u32 %s470_s28, 4  ;;  %s70_s9 = sshll.u32 %s544_s4, 4  ;;  %s28_s29 = int_to_ptr.vmem [resolvable:$true] %s27_s29  ;;  %s71_s9 = int_to_ptr.hbm [resolvable:$true] %s70_s9 }
   0x9   :  { %33 = dma.hbm_to_vmem [thread:$0]  %s26_s25, 384, %s28_s29, [#allocation7], %s468_s26, %s468_s26, %s469_s27  }
   0xa   :  { %s471_s10 = smov [#allocation11]   ;;  %s472_s1 = smov [#allocation12]  }
   0xb   :  { %s59_s11 = sshll.u32 %s471_s10, 4  ;;  %s72_s12 = sshll.u32 %s472_s1, 4  ;;  %s60_s11 = int_to_ptr.vmem [resolvable:$true] %s59_s11  ;;  %s73_s12 = int_to_ptr.vmem [resolvable:$true] %s72_s12 }
   0xc   :  { %65 = dma.hbm_to_vmem [thread:$0]  %s58_s7, 384, %s60_s11, [#allocation10], %s468_s26, %s468_s26, %s469_s27  }
   0xd   :  { %78 = dma.hbm_to_vmem [thread:$0]  %s71_s9, 384, %s73_s12, [#allocation13], %s468_s26, %s468_s26, %s469_s27  }
   0xe   :  { %459 = dma.done.wait [#allocation7], 384  }
   0xf   :  { %460 = vsyncadd [#allocation7], 4294966912 }
  0x10   :  { %461 = dma.done.wait [#allocation10], 768  }
  0x11   :  { %462 = vsyncadd [#allocation10], 4294966528 }
  0x12   :  { %463 = dma.done.wait [#allocation13], 384  }
  0x13   :  { %464 = vsyncadd [#allocation13], 4294966912  ;;  %v473_v0 = vmov 0.0   ;;  %v113_v1 = vld [vmem:[#allocation6] sm:$0xff]  ;;  %v114_v2 = vld [vmem:[#allocation6 + $0x8] sm:$0xff]  ;;  %p317_p0 = scmp.lt.s32.totalorder %s540_s0, 3072 }
  0x14   :  { %107 = vst [vmem:[#allocation2 + $0x10] sm:$0xff] %v473_v0  ;;  %v517_v3 = vld [vmem:[#allocation6 + $0x10] sm:$0xff]  ;;  %v119_v4 = vand.u32 2147483647, %v113_v1  ;;  %v120_v5 = vand.u32 2147483647, %v114_v2 }
  0x15   :  { %108 = vst [vmem:[#allocation2] sm:$0xff] %v473_v0  ;;  %v121_v6 = vand.u32 2147483647, %v517_v3  ;;  %v116_v21 = vld [vmem:[#allocation9] sm:$0xff]  ;;  %v117_v24 = vld [vmem:[#allocation9 + $0x8] sm:$0xff]  ;;  %v158_v27 = vsub.f32 0.0, %v113_v1 }
  0x16   :  { %109 = vst [vmem:[#allocation2 + $0x8] sm:$0xff] %v473_v0  ;;  %v122_v7 = vsub.f32 0.0, %v119_v4  ;;  %v123_v8 = vsub.f32 0.0, %v120_v5  ;;  %v118_v28 = vld [vmem:[#allocation9 + $0x10] sm:$0xff]  ;;  %v159_v31 = vsub.f32 0.0, %v114_v2  ;;  %v160_v33 = vsub.f32 0.0, %v517_v3 }
  0x17   :  { %110 = vst [vmem:[#allocation3 + $0x8] sm:$0xff] %v473_v0  ;;  %v124_v9 = vsub.f32 0.0, %v121_v6  ;;  %v167_v34 = vsub.f32 1.0, %v116_v21  ;;  %v168_v36 = vsub.f32 1.0, %v117_v24  ;;  %v161_v40 = vmax.f32 %v158_v27, 0.0 }
  0x18   :  { %111 = vst [vmem:[#allocation3] sm:$0xff] %v473_v0  ;;  %v125_v10 = vmul.f32 1.442695, %v122_v7  ;;  %v127_v11 = vmul.f32 1.442695, %v123_v8  ;;  %v169_v41 = vsub.f32 1.0, %v118_v28 }
  0x19   :  { %112 = vst [vmem:[#allocation3 + $0x10] sm:$0xff] %v473_v0  ;;  %v129_v12 = vmul.f32 1.442695, %v124_v9  ;;  %v162_v45 = vmax.f32 %v159_v31, 0.0  ;;  %v163_v48 = vmax.f32 %v160_v33, 0.0  ;;  %v170_v49 = vmul.f32 %v167_v34, %v113_v1 }
  0x1a   :  { %327 = vpow2.f32 %v125_v10  ;;  %v171_v52 = vmul.f32 %v168_v36, %v114_v2  ;;  %v172_v55 = vmul.f32 %v169_v41, %v517_v3 }
  0x1b   :  { %329 = vpow2.f32 %v127_v11 }
  0x1c   :  { %331 = vpow2.f32 %v129_v12 }
  0x20   :  { %v328_v13 = vpop.eup %327 }
  0x21   :  { %v330_v14 = vpop.eup %329  ;;  %v131_v15 = vadd.f32 1.0, %v328_v13  ;;  %v134_v16 = vmul.f32 -0.5, %v328_v13  ;;  %v137_v25 = vand.u32 2147483647, %v328_v13 }
  0x22   :  { %v332_v17 = vpop.eup %331  ;;  %v140_v18 = vadd.f32 1.0, %v330_v14  ;;  %v143_v19 = vmul.f32 -0.5, %v330_v14  ;;  %v146_v29 = vand.u32 2147483647, %v330_v14 }
  0x23   :  { %333 = vlog2.f32 %v131_v15  ;;  %v149_v20 = vadd.f32 1.0, %v332_v17  ;;  %v135_v22 = vadd.f32 1.0, %v134_v16  ;;  %v152_v23 = vmul.f32 -0.5, %v332_v17 }
  0x24   :  { %335 = vlog2.f32 %v140_v18  ;;  %v144_v26 = vadd.f32 1.0, %v143_v19  ;;  %v155_v32 = vand.u32 2147483647, %v332_v17  ;;  %vm521_vm0 = vcmp.lt.f32.partialorder %v137_v25, 0.0004427343 }
  0x25   :  { %337 = vlog2.f32 %v149_v20  ;;  %v153_v30 = vadd.f32 1.0, %v152_v23  ;;  %v136_v35 = vmul.f32 %v328_v13, %v135_v22  ;;  %vm147_vm1 = vcmp.lt.f32.partialorder %v146_v29, 0.0004427343 }
  0x26   :  { %v145_v39 = vmul.f32 %v330_v14, %v144_v26  ;;  %vm156_vm2 = vcmp.lt.f32.partialorder %v155_v32, 0.0004427343 }
  0x27   :  { %v154_v44 = vmul.f32 %v332_v17, %v153_v30 }
  0x29   :  { %v334_v37 = vpop.eup %333 }
  0x2a   :  { %v336_v42 = vpop.eup %335  ;;  %v133_v43 = vmul.f32 0.6931472, %v334_v37 }
  0x2b   :  { %v338_v46 = vpop.eup %337  ;;  %v142_v47 = vmul.f32 0.6931472, %v336_v42 }
  0x2c   :  { %v139_v50 = vsel %vm521_vm0, %v136_v35, %v133_v43  ;;  %v151_v51 = vmul.f32 0.6931472, %v338_v46 }
  0x2d   :  { %v148_v53 = vsel %vm147_vm1, %v145_v39, %v142_v47  ;;  %v164_v54 = vadd.f32 %v161_v40, %v139_v50  ;;  %187 = sbr.rel (%p317_p0) target bundleno = 59 (0x3b), region = 41 }
  0x2e   :  { %v157_v56 = vsel %vm156_vm2, %v154_v44, %v151_v51  ;;  %v165_v57 = vadd.f32 %v162_v45, %v148_v53 }
  0x2f   :  { %v166_v58 = vadd.f32 %v163_v48, %v157_v56  ;;  %v173_v59 = vadd.f32 %v170_v49, %v164_v54  ;;  %v176_v60 = vmul.f32 %v164_v54, %v116_v21 }
  0x30   :  { %v174_v61 = vadd.f32 %v171_v52, %v165_v57  ;;  %v177_v62 = vmul.f32 %v165_v57, %v117_v24 }
  0x31   :  { %v175_v63 = vadd.f32 %v172_v55, %v166_v58  ;;  %v178_v0 = vmul.f32 %v166_v58, %v118_v28 }
  0x32   :  { %v188_v1 = vld [vmem:[#allocation2 + $0x10] sm:$0xff]  ;;  %v189_v2 = vld [vmem:[#allocation2] sm:$0xff]  ;;  %v190_v4 = vld [vmem:[#allocation2 + $0x8] sm:$0xff] }
  0x33   :  { %v194_v5 = vadd.f32 %v188_v1, %v173_v59  ;;  %v195_v6 = vadd.f32 %v189_v2, %v174_v61  ;;  %v196_v3 = vadd.f32 %v190_v4, %v175_v63  ;;  %v200_v7 = vld [vmem:[#allocation3 + $0x8] sm:$0xff]  ;;  %v201_v8 = vld [vmem:[#allocation3] sm:$0xff]  ;;  %v202_v9 = vld [vmem:[#allocation3 + $0x10] sm:$0xff] }
  0x34   :  { %v206_v10 = vadd.f32 %v200_v7, %v176_v60  ;;  %v207_v11 = vadd.f32 %v201_v8, %v177_v62  ;;  %v208_v12 = vadd.f32 %v202_v9, %v178_v0 }
  0x35   :  { %197 = vst [vmem:[#allocation2 + $0x10] sm:$0xff] %v194_v5 }
  0x36   :  { %198 = vst [vmem:[#allocation2] sm:$0xff] %v195_v6 }
  0x37   :  { %199 = vst [vmem:[#allocation2 + $0x8] sm:$0xff] %v196_v3 }
  0x38   :  { %209 = vst [vmem:[#allocation3 + $0x8] sm:$0xff] %v206_v10 }
  0x39   :  { %210 = vst [vmem:[#allocation3] sm:$0xff] %v207_v11 }
  0x3a   :  { %211 = vst [vmem:[#allocation3 + $0x10] sm:$0xff] %v208_v12 }
  0x3b PF:  { %p318_p1 = scmp.ge.s32.totalorder %s540_s0, 3072 }
  0x3d   :  { %214 = sbr.rel (%p318_p1) target bundleno = 84 (0x54), region = 45 }
  0x42   :  { %v215_v13 = vlaneseq  ;;  %v231_v19 = vstv %s540_s0  ;;  %v235_v23 = vld [vmem:[#allocation2 + $0x10] sm:$0xff]  ;;  %v250_v24 = vld [vmem:[#allocation3 + $0x8] sm:$0xff]  ;;  %v237_v29 = vld [vmem:[#allocation2 + $0x8] sm:$0xff] }
  0x43   :  { %v236_v28 = vld [vmem:[#allocation2] sm:$0xff]  ;;  %v251_v31 = vld [vmem:[#allocation3] sm:$0xff]  ;;  %v252_v34 = vld [vmem:[#allocation3 + $0x10] sm:$0xff] }
  0x44   :  { %v216_v14 = vshrl.u32 %v215_v13, 7  ;;  %v220_v15 = vand.u32 127, %v215_v13 }
  0x46   :  { %v221_v16 = vmul.u32 128, %v216_v14  ;;  %v217_v17 = vadd.s32 8, %v216_v14  ;;  %v218_v18 = vadd.s32 16, %v216_v14 }
  0x48   :  { %v228_v20 = vadd.s32 %v221_v16, %v220_v15  ;;  %v222_v21 = vmul.u32 128, %v217_v17  ;;  %v223_v22 = vmul.u32 128, %v218_v18 }
  0x4a   :  { %vm232_vm3 = vcmp.lt.s32.totalorder %v228_v20, %v231_v19  ;;  %v229_v25 = vadd.s32 %v222_v21, %v220_v15  ;;  %v230_v26 = vadd.s32 %v223_v22, %v220_v15 }
  0x4b   :  { %v238_v27 = vsel %vm232_vm3, %v173_v59, 0.0  ;;  %v253_v30 = vsel %vm232_vm3, %v176_v60, 0.0 }
  0x4c   :  { %v244_v32 = vadd.f32 %v238_v27, %v235_v23  ;;  %vm233_vm4 = vcmp.lt.s32.totalorder %v229_v25, %v231_v19  ;;  %vm234_vm5 = vcmp.lt.s32.totalorder %v230_v26, %v231_v19  ;;  %v259_v33 = vadd.f32 %v253_v30, %v250_v24 }
  0x4d   :  { %v239_v35 = vsel %vm233_vm4, %v174_v61, 0.0  ;;  %v240_v36 = vsel %vm234_vm5, %v175_v63, 0.0  ;;  %v254_v37 = vsel %vm233_vm4, %v177_v62, 0.0  ;;  %v255_v38 = vsel %vm234_vm5, %v178_v0, 0.0 }
  0x4e   :  { %247 = vst [vmem:[#allocation2 + $0x10] sm:$0xff] %v244_v32  ;;  %v245_v39 = vadd.f32 %v239_v35, %v236_v28  ;;  %v246_v40 = vadd.f32 %v240_v36, %v237_v29  ;;  %v260_v41 = vadd.f32 %v254_v37, %v251_v31  ;;  %v261_v42 = vadd.f32 %v255_v38, %v252_v34 }
  0x4f   :  { %262 = vst [vmem:[#allocation3 + $0x8] sm:$0xff] %v259_v33 }
  0x50   :  { %248 = vst [vmem:[#allocation2] sm:$0xff] %v245_v39 }
  0x51   :  { %249 = vst [vmem:[#allocation2 + $0x8] sm:$0xff] %v246_v40 }
  0x52   :  { %263 = vst [vmem:[#allocation3] sm:$0xff] %v260_v41 }
  0x53   :  { %264 = vst [vmem:[#allocation3 + $0x10] sm:$0xff] %v261_v42 }
  0x54 PF:  { %v268_v43 = vld [vmem:[#allocation11] sm:$0xff]  ;;  %v269_v44 = vld [vmem:[#allocation11 + $0x8] sm:$0xff]  ;;  %v270_v45 = vld [vmem:[#allocation11 + $0x10] sm:$0xff]  ;;  %s474_s0 = smov [#allocation14]   ;;  %s299_s20 = sshll.u32 %s545_s5, 4  ;;  %s300_s20 = int_to_ptr.hbm [resolvable:$true] %s299_s20 }
  0x55   :  { %v271_v46 = vld [vmem:[#allocation2 + $0x10] sm:$0xff]  ;;  %v277_v52 = vld [vmem:[#allocation12] sm:$0xff]  ;;  %v278_v53 = vld [vmem:[#allocation12 + $0x8] sm:$0xff]  ;;  %s297_s17 = sshll.u32 %s474_s0, 4  ;;  %s298_s17 = int_to_ptr.vmem [resolvable:$true] %s297_s17 }
  0x56   :  { %v274_v49 = vmul.f32 %v271_v46, %v268_v43  ;;  %v279_v54 = vld [vmem:[#allocation12 + $0x10] sm:$0xff]  ;;  %v280_v55 = vld [vmem:[#allocation3 + $0x8] sm:$0xff] }
  0x57   :  { %v272_v47 = vld [vmem:[#allocation2] sm:$0xff]  ;;  %v283_v58 = vmul.f32 %v280_v55, %v277_v52 }
  0x58   :  { %v273_v48 = vld [vmem:[#allocation2 + $0x8] sm:$0xff]  ;;  %v275_v50 = vmul.f32 %v272_v47, %v269_v44 }
  0x59   :  { %v276_v51 = vmul.f32 %v273_v48, %v270_v45  ;;  %v281_v56 = vld [vmem:[#allocation3] sm:$0xff]  ;;  %v286_v61 = vadd.f32 %v283_v58, %v274_v49 }
  0x5a   :  { %v282_v57 = vld [vmem:[#allocation3 + $0x10] sm:$0xff]  ;;  %v284_v59 = vmul.f32 %v281_v56, %v278_v53 }
  0x5b   :  { %v285_v60 = vmul.f32 %v282_v57, %v279_v54 }
  0x5c   :  { %v287_v62 = vadd.f32 %v284_v59, %v275_v50 }
  0x5d   :  { %v288_v63 = vadd.f32 %v285_v60, %v276_v51 }
  0x5e   :  { %v289_v0 = vadd.f32 %v287_v62, %v286_v61 }
  0x60   :  { %v290_v1 = vadd.f32 %v289_v0, %v288_v63 }
  0x62   :  { %291 = vst [vmem:[#allocation14] sm:$0xff] %v290_v1 }
  0x63   :  { %302 = dma.vmem_to_hbm [thread:$0]  %s298_s17, 128, %s300_s20, [#allocation8]  }
  0x64   :  { %465 = dma.done.wait [#allocation8], 128  }
  0x65   :  { %466 = vsyncadd [#allocation8], 4294967168 }
  0x66   :  { %307 = vsyncpa [#allocation7], 1 }
  0x67   :  { %308 = vsyncpa [#allocation10], 1 }
  0x68   :  { %309 = vsyncpa [#allocation13], 1 }
  0x69   :  { %310 = vsyncpa [#allocation8], 1 }

</bundles_post_ra>
